<compile_context>
chip_gen: v7x
topology: tpu7x:2x2x1
jax: 0.10.0
libtpu: 0.0.40
codegen_flags: <defaults>
</compile_context>

<pallas_src>
import functools

import jax
import jax.numpy as jnp
from jax.experimental import pallas as pl
from jax.experimental.pallas import tpu as pltpu


def _maxpool_kernel(x_ref, o_ref, *, k, H, W):
    """Pool one (g, H, W) slab into (g, Ho, Wo).  Windows are k x k with stride k
    (non-overlapping); ceil_mode tail windows reduce only over valid elements.

    x_ref : (g_blk, H, W)    input block (NCHW with N*C collapsed onto the leading axis)
    o_ref : (g_blk, Ho, Wo)  output block
    """
    Ho_full, H_rem = H // k, H % k     # full H-windows / ragged tail rows
    Wo_full, W_rem = W // k, W % k     # full W-windows / ragged tail cols
    Wo = Wo_full + (1 if W_rem else 0)

    def wpool_and_store(rows, row0, nrows):
        # rows: (g, nrows, W) value, already max-reduced along H for these output rows.
        # Pool along the minor (W/lane) axis per output column with contiguous static
        # slices; each iteration is a (g, nrows)-wide VPU max, then one small store.
        for j in range(Wo):
            w0 = j * k
            ww = min(k, W - w0)                    # k for full windows, W_rem for the tail
            col = rows[:, :, w0:w0 + 1]
            for dw in range(1, ww):
                col = jnp.maximum(col, rows[:, :, w0 + dw:w0 + dw + 1])
            o_ref[:, row0:row0 + nrows, j:j + 1] = col

    # ---- H-pool (sublane axis) for the full windows: k stride-k ref loads + VPU max ----
    if Ho_full > 0:
        hs = x_ref[:, pl.ds(0, Ho_full, k), :]
        for dh in range(1, k):
            hs = jnp.maximum(hs, x_ref[:, pl.ds(dh, Ho_full, k), :])     # (g, Ho_full, W)
        wpool_and_store(hs, 0, Ho_full)

    # ---- ceil-mode tail rows (last, partial window along H) ----------------------------
    if H_rem > 0:
        ht = x_ref[:, pl.ds(Ho_full * k, 1), :]
        for dh in range(1, H_rem):
            ht = jnp.maximum(ht, x_ref[:, pl.ds(Ho_full * k + dh, 1), :])  # (g, 1, W)
        wpool_and_store(ht, Ho_full, 1)


def maxpool2d_ceil(x_nchw, kernel=3, stride=None):
    """MaxPool2d(kernel_size=3, ceil_mode=True, padding=0) on NCHW input via Pallas."""
    if stride is None:
        stride = kernel
    assert stride == kernel, "fast path assumes non-overlapping windows (k == s)"
    N, C, H, W = x_nchw.shape
    k = kernel

    # PyTorch ceil_mode output size with padding=0 and s == k: the "last window must
    # start inside the input" clamp never fires, so Ho == ceil(H / k).
    Ho = -(-H // k)
    Wo = -(-W // k)

    G = N * C
    itemsize = jnp.dtype(x_nchw.dtype).itemsize

    # Pick g_blk (leading-dim block over the collapsed N*C axis):
    #  * keep each input block under a small VMEM budget (double-buffered by Pallas),
    #  * prefer >=2 grid steps so the "parallel" axis can shard across v7x's 2 TCs.
    budget = 4 << 20
    cap = max(1, budget // max(1, H * W * itemsize))
    divisors = [d for d in range(1, G + 1) if G % d == 0 and d <= cap]
    multi_step = [d for d in divisors if G // d >= 2]
    g_blk = max(multi_step) if multi_step else max(divisors)

    # Free reshape (collapses contiguous leading dims, no HBM pass).
    x = x_nchw.reshape(G, H, W)

    cost = pl.CostEstimate(
        flops=G * Ho * Wo * (k * k - 1),
        transcendentals=0,
        bytes_accessed=G * (H * W + Ho * Wo) * itemsize,
    )

    kern = functools.partial(_maxpool_kernel, k=k, H=H, W=W)

    out = pl.pallas_call(
        kern,
        out_shape=jax.ShapeDtypeStruct((G, Ho, Wo), x_nchw.dtype),
        grid_spec=pltpu.PrefetchScalarGridSpec(
            num_scalar_prefetch=0,
            grid=(G // g_blk,),
            in_specs=[pl.BlockSpec((g_blk, H, W), lambda g: (g, 0, 0))],
            out_specs=pl.BlockSpec((g_blk, Ho, Wo), lambda g: (g, 0, 0)),
        ),
        compiler_params=pltpu.CompilerParams(
            dimension_semantics=("parallel",)),
        cost_estimate=cost,
    )(x)

    # Free reshape back to NCHW.
    return out.reshape(N, C, Ho, Wo)


def _reference_maxpool(x_nchw, kernel=3, stride=3):
    """Pure-JAX reference with ceil_mode semantics (validation only)."""
    N, C, H, W = x_nchw.shape
    Ho = -(-H // kernel)
    Wo = -(-W // kernel)
    Hp = Ho * kernel
    Wp = Wo * kernel
    return jax.lax.reduce_window(
        x_nchw, -jnp.inf, jax.lax.max,
        window_dimensions=(1, 1, kernel, kernel),
        window_strides=(1, 1, stride, stride),
        padding=((0, 0), (0, 0), (0, Hp - H), (0, Wp - W)),
    )


if __name__ == "__main__":
    key = jax.random.PRNGKey(0)
    # Small input consistent with the module's forward: NCHW
    x = jax.random.normal(key, (2, 4, 16, 16), dtype=jnp.float32)

    y = maxpool2d_ceil(x)          # expected shape (2, 4, 6, 6)
    y = jax.block_until_ready(y)

    y_ref = _reference_maxpool(x)
    assert y.shape == (2, 4, 6, 6), y.shape
    assert jnp.allclose(y, y_ref), "Pallas maxpool mismatch vs reference"

    print("KERNEL_OK")
</pallas_src>

<mosaic_0001>
module attributes {stable_mosaic.version = 11 : i64} {
  func.func @_maxpool_kernel(%arg0: i32, %arg1: memref<4x16x16xf32, #tpu.memory_space<vmem>>, %arg2: memref<4x6x6xf32, #tpu.memory_space<vmem>>) attributes {dimension_semantics = [#tpu.dimension_semantics<parallel>], iteration_bounds = array<i64: 2>, scalar_prefetch = 0 : i64, scratch_operands = 0 : i64, tpu.core_type = #tpu.core_type<tc>, window_params = [{transform_indices = @transform_0, window_bounds = array<i64: 4, 16, 16>}, {transform_indices = @transform_1, window_bounds = array<i64: 4, 6, 6>}]} {
    %c0 = arith.constant 0 : index
    %c0_0 = arith.constant 0 : index
    %c0_1 = arith.constant 0 : index
    %0 = tpu.strided_load %arg1[%c0, %c0_0, %c0_1] {strides = array<i32: 1, 3, 1>} : memref<4x16x16xf32, #tpu.memory_space<vmem>>, vector<4x5x16xf32>
    %c0_2 = arith.constant 0 : index
    %c1 = arith.constant 1 : index
    %c0_3 = arith.constant 0 : index
    %1 = tpu.strided_load %arg1[%c0_2, %c1, %c0_3] {strides = array<i32: 1, 3, 1>} : memref<4x16x16xf32, #tpu.memory_space<vmem>>, vector<4x5x16xf32>
    %2 = arith.maximumf %0, %1 : vector<4x5x16xf32>
    %c0_4 = arith.constant 0 : index
    %c2 = arith.constant 2 : index
    %c0_5 = arith.constant 0 : index
    %3 = tpu.strided_load %arg1[%c0_4, %c2, %c0_5] {strides = array<i32: 1, 3, 1>} : memref<4x16x16xf32, #tpu.memory_space<vmem>>, vector<4x5x16xf32>
    %4 = arith.maximumf %2, %3 : vector<4x5x16xf32>
    %5 = vector.extract_strided_slice %4 {offsets = [0, 0, 0], sizes = [4, 5, 1], strides = [1, 1, 1]} : vector<4x5x16xf32> to vector<4x5x1xf32>
    %6 = vector.extract_strided_slice %4 {offsets = [0, 0, 1], sizes = [4, 5, 1], strides = [1, 1, 1]} : vector<4x5x16xf32> to vector<4x5x1xf32>
    %7 = arith.maximumf %5, %6 : vector<4x5x1xf32>
    %8 = vector.extract_strided_slice %4 {offsets = [0, 0, 2], sizes = [4, 5, 1], strides = [1, 1, 1]} : vector<4x5x16xf32> to vector<4x5x1xf32>
    %9 = arith.maximumf %7, %8 : vector<4x5x1xf32>
    %c0_6 = arith.constant 0 : index
    %c0_7 = arith.constant 0 : index
    %c0_8 = arith.constant 0 : index
    %10 = vector.load %arg2[%c0_6, %c0_7, %c0_8] : memref<4x6x6xf32, #tpu.memory_space<vmem>>, vector<4x5x1xf32>
    tpu.vector_store %arg2[%c0_6, %c0_7, %c0_8], %9 {strides = array<i32>} : memref<4x6x6xf32, #tpu.memory_space<vmem>>, vector<4x5x1xf32>,
    %11 = vector.extract_strided_slice %4 {offsets = [0, 0, 3], sizes = [4, 5, 1], strides = [1, 1, 1]} : vector<4x5x16xf32> to vector<4x5x1xf32>
    %12 = vector.extract_strided_slice %4 {offsets = [0, 0, 4], sizes = [4, 5, 1], strides = [1, 1, 1]} : vector<4x5x16xf32> to vector<4x5x1xf32>
    %13 = arith.maximumf %11, %12 : vector<4x5x1xf32>
    %14 = vector.extract_strided_slice %4 {offsets = [0, 0, 5], sizes = [4, 5, 1], strides = [1, 1, 1]} : vector<4x5x16xf32> to vector<4x5x1xf32>
    %15 = arith.maximumf %13, %14 : vector<4x5x1xf32>
    %c0_9 = arith.constant 0 : index
    %c0_10 = arith.constant 0 : index
    %c1_11 = arith.constant 1 : index
    %16 = vector.load %arg2[%c0_9, %c0_10, %c1_11] : memref<4x6x6xf32, #tpu.memory_space<vmem>>, vector<4x5x1xf32>
    tpu.vector_store %arg2[%c0_9, %c0_10, %c1_11], %15 {strides = array<i32>} : memref<4x6x6xf32, #tpu.memory_space<vmem>>, vector<4x5x1xf32>,
    %17 = vector.extract_strided_slice %4 {offsets = [0, 0, 6], sizes = [4, 5, 1], strides = [1, 1, 1]} : vector<4x5x16xf32> to vector<4x5x1xf32>
    %18 = vector.extract_strided_slice %4 {offsets = [0, 0, 7], sizes = [4, 5, 1], strides = [1, 1, 1]} : vector<4x5x16xf32> to vector<4x5x1xf32>
    %19 = arith.maximumf %17, %18 : vector<4x5x1xf32>
    %20 = vector.extract_strided_slice %4 {offsets = [0, 0, 8], sizes = [4, 5, 1], strides = [1, 1, 1]} : vector<4x5x16xf32> to vector<4x5x1xf32>
    %21 = arith.maximumf %19, %20 : vector<4x5x1xf32>
    %c0_12 = arith.constant 0 : index
    %c0_13 = arith.constant 0 : index
    %c2_14 = arith.constant 2 : index
    %22 = vector.load %arg2[%c0_12, %c0_13, %c2_14] : memref<4x6x6xf32, #tpu.memory_space<vmem>>, vector<4x5x1xf32>
    tpu.vector_store %arg2[%c0_12, %c0_13, %c2_14], %21 {strides = array<i32>} : memref<4x6x6xf32, #tpu.memory_space<vmem>>, vector<4x5x1xf32>,
    %23 = vector.extract_strided_slice %4 {offsets = [0, 0, 9], sizes = [4, 5, 1], strides = [1, 1, 1]} : vector<4x5x16xf32> to vector<4x5x1xf32>
    %24 = vector.extract_strided_slice %4 {offsets = [0, 0, 10], sizes = [4, 5, 1], strides = [1, 1, 1]} : vector<4x5x16xf32> to vector<4x5x1xf32>
    %25 = arith.maximumf %23, %24 : vector<4x5x1xf32>
    %26 = vector.extract_strided_slice %4 {offsets = [0, 0, 11], sizes = [4, 5, 1], strides = [1, 1, 1]} : vector<4x5x16xf32> to vector<4x5x1xf32>
    %27 = arith.maximumf %25, %26 : vector<4x5x1xf32>
    %c0_15 = arith.constant 0 : index
    %c0_16 = arith.constant 0 : index
    %c3 = arith.constant 3 : index
    %28 = vector.load %arg2[%c0_15, %c0_16, %c3] : memref<4x6x6xf32, #tpu.memory_space<vmem>>, vector<4x5x1xf32>
    tpu.vector_store %arg2[%c0_15, %c0_16, %c3], %27 {strides = array<i32>} : memref<4x6x6xf32, #tpu.memory_space<vmem>>, vector<4x5x1xf32>,
    %29 = vector.extract_strided_slice %4 {offsets = [0, 0, 12], sizes = [4, 5, 1], strides = [1, 1, 1]} : vector<4x5x16xf32> to vector<4x5x1xf32>
    %30 = vector.extract_strided_slice %4 {offsets = [0, 0, 13], sizes = [4, 5, 1], strides = [1, 1, 1]} : vector<4x5x16xf32> to vector<4x5x1xf32>
    %31 = arith.maximumf %29, %30 : vector<4x5x1xf32>
    %32 = vector.extract_strided_slice %4 {offsets = [0, 0, 14], sizes = [4, 5, 1], strides = [1, 1, 1]} : vector<4x5x16xf32> to vector<4x5x1xf32>
    %33 = arith.maximumf %31, %32 : vector<4x5x1xf32>
    %c0_17 = arith.constant 0 : index
    %c0_18 = arith.constant 0 : index
    %c4 = arith.constant 4 : index
    %34 = vector.load %arg2[%c0_17, %c0_18, %c4] : memref<4x6x6xf32, #tpu.memory_space<vmem>>, vector<4x5x1xf32>
    tpu.vector_store %arg2[%c0_17, %c0_18, %c4], %33 {strides = array<i32>} : memref<4x6x6xf32, #tpu.memory_space<vmem>>, vector<4x5x1xf32>,
    %35 = vector.extract_strided_slice %4 {offsets = [0, 0, 15], sizes = [4, 5, 1], strides = [1, 1, 1]} : vector<4x5x16xf32> to vector<4x5x1xf32>
    %c0_19 = arith.constant 0 : index
    %c0_20 = arith.constant 0 : index
    %c5 = arith.constant 5 : index
    %36 = vector.load %arg2[%c0_19, %c0_20, %c5] : memref<4x6x6xf32, #tpu.memory_space<vmem>>, vector<4x5x1xf32>
    tpu.vector_store %arg2[%c0_19, %c0_20, %c5], %35 {strides = array<i32>} : memref<4x6x6xf32, #tpu.memory_space<vmem>>, vector<4x5x1xf32>,
    %c0_21 = arith.constant 0 : index
    %c15 = arith.constant 15 : index
    %c0_22 = arith.constant 0 : index
    %37 = vector.load %arg1[%c0_21, %c15, %c0_22] : memref<4x16x16xf32, #tpu.memory_space<vmem>>, vector<4x1x16xf32>
    %38 = vector.extract_strided_slice %37 {offsets = [0, 0, 0], sizes = [4, 1, 1], strides = [1, 1, 1]} : vector<4x1x16xf32> to vector<4x1x1xf32>
    %39 = vector.extract_strided_slice %37 {offsets = [0, 0, 1], sizes = [4, 1, 1], strides = [1, 1, 1]} : vector<4x1x16xf32> to vector<4x1x1xf32>
    %40 = arith.maximumf %38, %39 : vector<4x1x1xf32>
    %41 = vector.extract_strided_slice %37 {offsets = [0, 0, 2], sizes = [4, 1, 1], strides = [1, 1, 1]} : vector<4x1x16xf32> to vector<4x1x1xf32>
    %42 = arith.maximumf %40, %41 : vector<4x1x1xf32>
    %c0_23 = arith.constant 0 : index
    %c5_24 = arith.constant 5 : index
    %c0_25 = arith.constant 0 : index
    %43 = vector.load %arg2[%c0_23, %c5_24, %c0_25] : memref<4x6x6xf32, #tpu.memory_space<vmem>>, vector<4x1x1xf32>
    tpu.vector_store %arg2[%c0_23, %c5_24, %c0_25], %42 {strides = array<i32>} : memref<4x6x6xf32, #tpu.memory_space<vmem>>, vector<4x1x1xf32>,
    %44 = vector.extract_strided_slice %37 {offsets = [0, 0, 3], sizes = [4, 1, 1], strides = [1, 1, 1]} : vector<4x1x16xf32> to vector<4x1x1xf32>
    %45 = vector.extract_strided_slice %37 {offsets = [0, 0, 4], sizes = [4, 1, 1], strides = [1, 1, 1]} : vector<4x1x16xf32> to vector<4x1x1xf32>
    %46 = arith.maximumf %44, %45 : vector<4x1x1xf32>
    %47 = vector.extract_strided_slice %37 {offsets = [0, 0, 5], sizes = [4, 1, 1], strides = [1, 1, 1]} : vector<4x1x16xf32> to vector<4x1x1xf32>
    %48 = arith.maximumf %46, %47 : vector<4x1x1xf32>
    %c0_26 = arith.constant 0 : index
    %c5_27 = arith.constant 5 : index
    %c1_28 = arith.constant 1 : index
    %49 = vector.load %arg2[%c0_26, %c5_27, %c1_28] : memref<4x6x6xf32, #tpu.memory_space<vmem>>, vector<4x1x1xf32>
    tpu.vector_store %arg2[%c0_26, %c5_27, %c1_28], %48 {strides = array<i32>} : memref<4x6x6xf32, #tpu.memory_space<vmem>>, vector<4x1x1xf32>,
    %50 = vector.extract_strided_slice %37 {offsets = [0, 0, 6], sizes = [4, 1, 1], strides = [1, 1, 1]} : vector<4x1x16xf32> to vector<4x1x1xf32>
    %51 = vector.extract_strided_slice %37 {offsets = [0, 0, 7], sizes = [4, 1, 1], strides = [1, 1, 1]} : vector<4x1x16xf32> to vector<4x1x1xf32>
    %52 = arith.maximumf %50, %51 : vector<4x1x1xf32>
    %53 = vector.extract_strided_slice %37 {offsets = [0, 0, 8], sizes = [4, 1, 1], strides = [1, 1, 1]} : vector<4x1x16xf32> to vector<4x1x1xf32>
    %54 = arith.maximumf %52, %53 : vector<4x1x1xf32>
    %c0_29 = arith.constant 0 : index
    %c5_30 = arith.constant 5 : index
    %c2_31 = arith.constant 2 : index
    %55 = vector.load %arg2[%c0_29, %c5_30, %c2_31] : memref<4x6x6xf32, #tpu.memory_space<vmem>>, vector<4x1x1xf32>
    tpu.vector_store %arg2[%c0_29, %c5_30, %c2_31], %54 {strides = array<i32>} : memref<4x6x6xf32, #tpu.memory_space<vmem>>, vector<4x1x1xf32>,
    %56 = vector.extract_strided_slice %37 {offsets = [0, 0, 9], sizes = [4, 1, 1], strides = [1, 1, 1]} : vector<4x1x16xf32> to vector<4x1x1xf32>
    %57 = vector.extract_strided_slice %37 {offsets = [0, 0, 10], sizes = [4, 1, 1], strides = [1, 1, 1]} : vector<4x1x16xf32> to vector<4x1x1xf32>
    %58 = arith.maximumf %56, %57 : vector<4x1x1xf32>
    %59 = vector.extract_strided_slice %37 {offsets = [0, 0, 11], sizes = [4, 1, 1], strides = [1, 1, 1]} : vector<4x1x16xf32> to vector<4x1x1xf32>
    %60 = arith.maximumf %58, %59 : vector<4x1x1xf32>
    %c0_32 = arith.constant 0 : index
    %c5_33 = arith.constant 5 : index
    %c3_34 = arith.constant 3 : index
    %61 = vector.load %arg2[%c0_32, %c5_33, %c3_34] : memref<4x6x6xf32, #tpu.memory_space<vmem>>, vector<4x1x1xf32>
    tpu.vector_store %arg2[%c0_32, %c5_33, %c3_34], %60 {strides = array<i32>} : memref<4x6x6xf32, #tpu.memory_space<vmem>>, vector<4x1x1xf32>,
    %62 = vector.extract_strided_slice %37 {offsets = [0, 0, 12], sizes = [4, 1, 1], strides = [1, 1, 1]} : vector<4x1x16xf32> to vector<4x1x1xf32>
    %63 = vector.extract_strided_slice %37 {offsets = [0, 0, 13], sizes = [4, 1, 1], strides = [1, 1, 1]} : vector<4x1x16xf32> to vector<4x1x1xf32>
    %64 = arith.maximumf %62, %63 : vector<4x1x1xf32>
    %65 = vector.extract_strided_slice %37 {offsets = [0, 0, 14], sizes = [4, 1, 1], strides = [1, 1, 1]} : vector<4x1x16xf32> to vector<4x1x1xf32>
    %66 = arith.maximumf %64, %65 : vector<4x1x1xf32>
    %c0_35 = arith.constant 0 : index
    %c5_36 = arith.constant 5 : index
    %c4_37 = arith.constant 4 : index
    %67 = vector.load %arg2[%c0_35, %c5_36, %c4_37] : memref<4x6x6xf32, #tpu.memory_space<vmem>>, vector<4x1x1xf32>
    tpu.vector_store %arg2[%c0_35, %c5_36, %c4_37], %66 {strides = array<i32>} : memref<4x6x6xf32, #tpu.memory_space<vmem>>, vector<4x1x1xf32>,
    %68 = vector.extract_strided_slice %37 {offsets = [0, 0, 15], sizes = [4, 1, 1], strides = [1, 1, 1]} : vector<4x1x16xf32> to vector<4x1x1xf32>
    %c0_38 = arith.constant 0 : index
    %c5_39 = arith.constant 5 : index
    %c5_40 = arith.constant 5 : index
    %69 = vector.load %arg2[%c0_38, %c5_39, %c5_40] : memref<4x6x6xf32, #tpu.memory_space<vmem>>, vector<4x1x1xf32>
    tpu.vector_store %arg2[%c0_38, %c5_39, %c5_40], %68 {strides = array<i32>} : memref<4x6x6xf32, #tpu.memory_space<vmem>>, vector<4x1x1xf32>,
    return
  }
  func.func @transform_0(%arg0: i32) -> (i32, i32, i32) {
    %c0_i32 = arith.constant 0 : i32
    %c0_i32_0 = arith.constant 0 : i32
    %c0_i32_1 = arith.constant 0 : i32
    return %arg0, %c0_i32, %c0_i32_0 : i32, i32, i32
  }
  func.func @transform_1(%arg0: i32) -> (i32, i32, i32) {
    %c0_i32 = arith.constant 0 : i32
    %c0_i32_0 = arith.constant 0 : i32
    %c0_i32_1 = arith.constant 0 : i32
    return %arg0, %c0_i32, %c0_i32_0 : i32, i32, i32
  }
}

</mosaic_0001>

<bundles_post_ra>
// kernel: tpu_custom_call.1
= control target key start
LH: loop header
LB: loop body
LE: loop exit
PB: predicated region body
PF: predicated region fallthrough
CT: control target
= control target key end

     0   :  { %6 = vsyncpa [#allocation3], 0  ;;  %s934_s0 = inlined_call_operand.hbm [shape: f32[8,16,16], index: 0, kind: input, shape index: {}]   ;;  %s935_s1 = inlined_call_operand.vmem [shape: f32[8,6,6], index: 1, kind: output, shape index: {}]  }
   0x1   :  { %8 = vsyncpa [#allocation3 + $0x1], 0  ;;  %s661_s6 = smov 0   ;;  %s663_s7 = smov 0  }
   0x2   :  { %s665_s8 = smov 0   ;;  %s667_s9 = smov 0  }
   0x3 LB: > { %s502_s10 = sadd.s32 4294967295, %s640_s9   ;;  %s681_s11 = sadd.s32 1, %s640_s9   ;;  %s640_s9 = sphi %s667_s9, %s942_s9   ;;  %s636_s8 = sphi %s665_s8, %s941_s8   ;;  %s632_s7 = sphi %s663_s7, %s940_s7   ;;  %s628_s6 = sphi %s661_s6, %s939_s6  }
   0x4   : > { %s18_s12 = ssub.s32 %s640_s9, %s681_s11  ;;  %s21_s13 = sadd.s32 1, %s636_s8 }
   0x5   : > { %p19_p0 = scmp.eq.s32.totalorder %s18_s12, 0  ;;  %p28_p1 = scmp.ne.s32.totalorder %s636_s8, %s632_s7 }
   0x6   : > { %p29_p2 = scmp.eq.s32.totalorder %s640_s9, 0  ;;  %p34_p3 = scmp.ne.s32.totalorder %s632_s7, %s628_s6 }
   0x7   : > { %s691_s14 = scalar_select %p19_p0, %s636_s8, %s21_s13  }
   0x8   : > { %p30_p4 = por %p29_p2, %p28_p1  ;;  %p35_p5 = scmp.eq.s32.totalorder %s502_s10, 0 }
   0x9   : > { %p535_p6 = scmp.lt.s32.totalorder %s640_s9, 2  ;;  %s84_s16 = sand.u32 1, %s636_s8  }
   0xa   : > { %p696_p7 = por %p35_p5, %p34_p3  ;;  %s506_s17 = sshll.u32 %s84_s16, 6 }
   0xb   : > { %s528_s18 = sshll.u32 %s640_s9, 10  ;;  %s88_s22 = scalar_lea.vmem [#allocation2], %s506_s17 }
   0xc   : > { %s705_s21 = scalar_lea.hbm %s934_s0, %s528_s18  ;;  %s96_s23 = sshll.u32 %s88_s22, 4  ;;  %s707_s23 = int_to_ptr.vmem [resolvable:$true] %s96_s23 }
   0xd   : > { %p709_p8 = pnand %p535_p6, %p30_p4  ;;  %s714_s25 = scalar_lea.sflag [#allocation3], %s84_s16 }
   0xe   : > { %s576_s26 = scalar_lea.hbm %s705_s21, 1024  ;;  %s581_s29 = scalar_lea.hbm %s934_s0, 2048 }
   0xf   : > { %p577_p10 = scmp.ne.s32.totalorder %s705_s21, %s576_s26  ;;  %p578_p11 = pneg %p709_p8 }
  0x10   : > { %p582_p0 = scmp.lt.u32.totalorder %s705_s21, %s934_s0  ;;  %p583_p1 = scmp.lt.u32.totalorder %s581_s29, %s576_s26 }
  0x11   : > { %p579_p12 = pnand %p578_p11, %p577_p10  ;;  %p585_p3 = scmp.lt.u32.totalorder %s576_s26, %s705_s21 }
  0x12   : > { %p584_p2 = por %p583_p1, %p582_p0 }
  0x13   : > { %p580_p13 = pneg %p579_p12 }
  0x14   : > { %p586_p4 = por %p585_p3, %p584_p2 }
  0x16   : > { %p587_p5 = pnand %p586_p4, %p580_p13 }
  0x18   : > { %590 = shalt.err (!%p587_p5)
}
  0x19   : > { %s591_s3 = scalar_lea.vmem %s707_s23, 1024  ;;  %s642_s4 = smov [#allocation2]  }
  0x1a   : > { %p592_p6 = scmp.ne.s32.totalorder %s707_s23, %s591_s3  ;;  %s596_s5 = sshll.u32 %s642_s4, 4  ;;  %s597_s5 = int_to_ptr.vmem [resolvable:$false] %s596_s5 }
  0x1b   : > { %s598_s6 = scalar_lea.vmem %s597_s5, 2048  ;;  %p599_p9 = scmp.lt.s32.totalorder %s707_s23, %s597_s5 }
  0x1c   : > { %p594_p10 = pnand %p592_p6, %p578_p11  ;;  %p600_p0 = scmp.lt.s32.totalorder %s598_s6, %s591_s3 }
  0x1e   : > { %p595_p12 = pneg %p594_p10  ;;  %p601_p1 = por %p600_p0, %p599_p9 }
  0x20   : > { %p602_p2 = pnand %p601_p1, %p595_p12 }
  0x22   : > { %605 = shalt.err (!%p602_p2)
}
  0x23   : > { %s643_s12 = smov 128   ;;  %s644_s13 = smov 8  }
  0x24   : > { %534 = dma.hbm_to_vmem [thread:$0]  (!%p709_p8), %s705_s21, 1024, %s707_s23, %s714_s25, %s643_s12, %s643_s12, %s644_s13  }
  0x25   : > { %p104_p11 = scmp.lt.s32.totalorder %s640_s9, 3  ;;  %p938_p13 = scmp.ge.s32.totalorder %s640_s9, 1 }
  0x27   : > { %p105_p3 = pnand %p938_p13, %p104_p11 }
  0x28   : > { %s110_s16 = sand.u32 (!%p105_p3), 1, %s632_s7  }
  0x29   : > { %108 = sbr.rel (%p105_p3) target bundleno = 379 (0x17b), region = 24  ;;  %s511_s17 = sshll.u32 (!%p105_p3), %s110_s16, 6 }
  0x2a   : > { %s111_s18 = scalar_lea.sflag (!%p105_p3), [#allocation3], %s110_s16  ;;  %s746_s19 = scalar_lea.vmem (!%p105_p3), [#allocation2], %s511_s17 }
  0x30   : > { %623 = dma.done.wait (%p696_p7), %s111_s18, 1024  }
  0x31   : > { %625 = vsyncadd (%p696_p7), %s111_s18, 4294966272  ;;  %v753_v0 = vld [vmem:[%s746_s19 + $0x1f] sm:$0x1]  ;;  %v756_v1 = vld [vmem:[%s746_s19 + $0xf] sm:$0x1]  ;;  %s645_s20 = smov 127  }
  0x32   : > { %v759_v2 = vld [vmem:[%s746_s19 + $0x2f] sm:$0x1]  ;;  %311 = vrot.lane.b32.xlu1 %v753_v0, %s645_s20  ;;  %309 = vrot.lane.b32.xlu0 %v756_v1, %s645_s20  ;;  %v514_v3 = vld [vmem:[%s746_s19 + $0x10] ss:$3 sm:$0x1f]  ;;  %s646_s15 = smov 126  }
  0x33   : > { %v518_v4 = vld [vmem:[%s746_s19 + $0x11] ss:$3 sm:$0x1f]  ;;  %v522_v6 = vld [vmem:[%s746_s19 + $0x12] ss:$3 sm:$0x1f] }
  0x34   : > { %v156_v5 = vmax.f32 %v514_v3, %v518_v4  ;;  %v140_v7 = vld [vmem:[%s746_s19] ss:$3 sm:$0x1f]  ;;  %v517_v8 = vld [vmem:[%s746_s19 + $0x1] ss:$3 sm:$0x1f] }
  0x35   : > { %v521_v9 = vld [vmem:[%s746_s19 + $0x2] ss:$3 sm:$0x1f]  ;;  %v155_v10 = vmax.f32 %v140_v7, %v517_v8  ;;  %v515_v11 = vld [vmem:[%s746_s19 + $0x20] ss:$3 sm:$0x1f] }
  0x36   : > { %v519_v12 = vld [vmem:[%s746_s19 + $0x21] ss:$3 sm:$0x1f]  ;;  %325 = vrot.lane.b32.xlu1 %v756_v1, %s646_s15  ;;  %313 = vrot.lane.b32.xlu0 %v759_v2, %s645_s20  ;;  %v168_v13 = vmax.f32 %v156_v5, %v522_v6  ;;  %v523_v15 = vld [vmem:[%s746_s19 + $0x22] ss:$3 sm:$0x1f] }
  0x37   : > { %v157_v14 = vmax.f32 %v515_v11, %v519_v12  ;;  %v167_v16 = vmax.f32 %v155_v10, %v521_v9  ;;  %v516_v17 = vld [vmem:[%s746_s19 + $0x30] ss:$3 sm:$0x1f]  ;;  %v520_v18 = vld [vmem:[%s746_s19 + $0x31] ss:$3 sm:$0x1f] }
  0x38   : > { %v158_v20 = vmax.f32 %v516_v17, %v520_v18  ;;  %v524_v21 = vld [vmem:[%s746_s19 + $0x32] ss:$3 sm:$0x1f]  ;;  %v791_v23 = vld [vmem:[%s746_s19 + $0x3f] sm:$0x1]  ;;  %s512_s21 = sshll.u32 %s502_s10, 2 }
  0x39   : > { %v169_v19 = vmax.f32 %v157_v14, %v523_v15  ;;  %p135_p7 = scmp.lt.s32.totalorder %s512_s21, 7  ;;  %vm341_vm0 = vcmask 0   ;;  %vm207_vm1 = vcmask 4096   ;;  %s647_s9 = smov 118   ;;  %vm362_vm2 = vcmask 8200  }
  0x3a   : > { %177 = vrot.lane.b32.xlu1 %v168_v13, %s645_s20  ;;  %175 = vrot.lane.b32.xlu0 %v167_v16, %s645_s20  ;;  %v785_v22 = vmax.f32 %v158_v20, %v524_v21  ;;  %s648_s10 = smov 124   ;;  %s649_s26 = smov 122   ;;  %vm228_vm3 = vcmask 12296   ;;  %vm379_vm4 = vcmask 16400   ;;  %vm396_vm5 = vcmask 24600  }
  0x3b   : > { %s944_s21 = smov (!%p135_p7, %s512_s21), 7  ;;  %s650_s27 = smov 120   ;;  %vm413_vm6 = vcmask 32800   ;;  %vm245_vm7 = vcmask 20496   ;;  %vm262_vm8 = vcmask 28696   ;;  %vm430_vm9 = vcmask 41000  }
  0x3c   : > { %s513_s22 = sshll.u32 %s944_s21, 3  ;;  %vm279_vm10 = vcmask 36896   ;;  %vm296_vm11 = vcmask 45096  }
  0x3d   : > { %s810_s25 = scalar_lea.vmem %s935_s1, %s513_s22 }
  0x3e   : > { %191 = vrot.lane.b32.xlu1 %v167_v16, %s646_s15  ;;  %179 = vrot.lane.b32.xlu0 %v169_v19, %s645_s20 }
  0x42   : > { %193 = vrot.lane.b32.xlu1 %v168_v13, %s646_s15  ;;  %181 = vrot.lane.b32.xlu0 %v785_v22, %s645_s20 }
  0x46   : > { %327 = vrot.lane.b32.xlu1 %v753_v0, %s646_s15  ;;  %315 = vrot.lane.b32.xlu0 %v791_v23, %s645_s20 }
  0x4a   : > { %329 = vrot.lane.b32.xlu1 %v759_v2, %s646_s15  ;;  %195 = vrot.lane.b32.xlu0 %v169_v19, %s646_s15 }
  0x4e   : > { %331 = vrot.lane.b32.xlu1 %v791_v23, %s646_s15  ;;  %197 = vrot.lane.b32.xlu0 %v785_v22, %s646_s15 }
  0xa4   : > { %v312_v24 = vpop.permute.xlu1 %311  ;;  %v310_v25 = vpop.permute.xlu0 %309 }
  0xa5   : > { %v321_v26 = vmax.f32 %v756_v1, %v310_v25  ;;  %v322_v40 = vmax.f32 %v753_v0, %v312_v24 }
  0xa8   : > { %v326_v27 = vpop.permute.xlu1 %325  ;;  %v314_v28 = vpop.permute.xlu0 %313 }
  0xa9   : > { %v812_v29 = vmax.f32 %v321_v26, %v326_v27  ;;  %v323_v44 = vmax.f32 %v759_v2, %v314_v28 }
  0xab   : > { %342 = vst.msk [vmem:[%s810_s25 + $0x5] sm:$0x1] %vm341_vm0, %v812_v29  ;;  %350 = vrot.lane.b32.xlu0 %v812_v29, %s646_s15 }
  0xac   : > { %v178_v30 = vpop.permute.xlu1 %177  ;;  %v176_v31 = vpop.permute.xlu0 %175 }
  0xad   : > { %v187_v32 = vmax.f32 %v167_v16, %v176_v31  ;;  %v188_v36 = vmax.f32 %v168_v13, %v178_v30 }
  0xb0   : > { %v192_v33 = vpop.permute.xlu1 %191  ;;  %v180_v34 = vpop.permute.xlu0 %179 }
  0xb1   : > { %v203_v35 = vmax.f32 %v187_v32, %v192_v33  ;;  %v189_v45 = vmax.f32 %v169_v19, %v180_v34 }
  0xb3   : > { %208 = vst.msk [vmem:[%s810_s25] sm:$0x1f] %vm207_vm1, %v203_v35  ;;  %216 = vrot.lane.b32.xlu0 %v203_v35, %s646_s15 }
  0xb4   : > { %v194_v37 = vpop.permute.xlu1 %193  ;;  %v182_v38 = vpop.permute.xlu0 %181 }
  0xb5   : > { %v204_v39 = vmax.f32 %v188_v36, %v194_v37  ;;  %v190_v51 = vmax.f32 %v785_v22, %v182_v38 }
  0xb7   : > { %209 = vst.msk [vmem:[%s810_s25 + $0x8] sm:$0x1f] %vm207_vm1, %v204_v39  ;;  %284 = vrot.lane.b32.xlu0 %v167_v16, %s647_s9 }
  0xb8   : > { %v328_v41 = vpop.permute.xlu1 %327  ;;  %v316_v42 = vpop.permute.xlu0 %315 }
  0xb9   : > { %v338_v43 = vmax.f32 %v322_v40, %v328_v41  ;;  %v324_v48 = vmax.f32 %v791_v23, %v316_v42 }
  0xbb   : > { %343 = vst.msk [vmem:[%s810_s25 + $0xd] sm:$0x1] %vm341_vm0, %v338_v43  ;;  %352 = vrot.lane.b32.xlu1 %v338_v43, %s646_s15  ;;  %286 = vrot.lane.b32.xlu0 %v168_v13, %s647_s9 }
  0xbc   : > { %v330_v46 = vpop.permute.xlu1 %329  ;;  %v196_v47 = vpop.permute.xlu0 %195 }
  0xbd   : > { %v339_v49 = vmax.f32 %v323_v44, %v330_v46  ;;  %v205_v50 = vmax.f32 %v189_v45, %v196_v47 }
  0xbf   : > { %344 = vst.msk [vmem:[%s810_s25 + $0x15] sm:$0x1] %vm341_vm0, %v339_v49  ;;  %354 = vrot.lane.b32.xlu1 %v339_v49, %s646_s15  ;;  %288 = vrot.lane.b32.xlu0 %v169_v19, %s647_s9 }
  0xc0   : > { %210 = vst.msk [vmem:[%s810_s25 + $0x10] sm:$0x1f] %vm207_vm1, %v205_v50  ;;  %v332_v52 = vpop.permute.xlu1 %331  ;;  %v198_v53 = vpop.permute.xlu0 %197 }
  0xc1   : > { %v340_v54 = vmax.f32 %v324_v48, %v332_v52  ;;  %v206_v55 = vmax.f32 %v190_v51, %v198_v53 }
  0xc3   : > { %345 = vst.msk [vmem:[%s810_s25 + $0x1d] sm:$0x1] %vm341_vm0, %v340_v54  ;;  %356 = vrot.lane.b32.xlu1 %v340_v54, %s646_s15  ;;  %220 = vrot.lane.b32.xlu0 %v205_v50, %s646_s15 }
  0xc4   : > { %211 = vst.msk [vmem:[%s810_s25 + $0x18] sm:$0x1f] %vm207_vm1, %v206_v55 }
  0xc7   : > { %367 = vrot.lane.b32.xlu1 %v812_v29, %s648_s10  ;;  %222 = vrot.lane.b32.xlu0 %v206_v55, %s646_s15 }
  0xcb   : > { %369 = vrot.lane.b32.xlu1 %v338_v43, %s648_s10  ;;  %233 = vrot.lane.b32.xlu0 %v203_v35, %s648_s10 }
  0xcf   : > { %371 = vrot.lane.b32.xlu1 %v339_v49, %s648_s10  ;;  %235 = vrot.lane.b32.xlu0 %v204_v39, %s648_s10 }
  0xd3   : > { %373 = vrot.lane.b32.xlu1 %v340_v54, %s648_s10  ;;  %237 = vrot.lane.b32.xlu0 %v205_v50, %s648_s10 }
  0xd7   : > { %384 = vrot.lane.b32.xlu1 %v812_v29, %s649_s26  ;;  %239 = vrot.lane.b32.xlu0 %v206_v55, %s648_s10 }
  0xdb   : > { %386 = vrot.lane.b32.xlu1 %v338_v43, %s649_s26  ;;  %250 = vrot.lane.b32.xlu0 %v203_v35, %s649_s26 }
  0xdf   : > { %388 = vrot.lane.b32.xlu1 %v339_v49, %s649_s26  ;;  %252 = vrot.lane.b32.xlu0 %v204_v39, %s649_s26 }
  0xe3   : > { %390 = vrot.lane.b32.xlu1 %v340_v54, %s649_s26  ;;  %254 = vrot.lane.b32.xlu0 %v205_v50, %s649_s26 }
  0xe7   : > { %401 = vrot.lane.b32.xlu1 %v812_v29, %s650_s27  ;;  %256 = vrot.lane.b32.xlu0 %v206_v55, %s649_s26 }
  0xeb   : > { %403 = vrot.lane.b32.xlu1 %v338_v43, %s650_s27  ;;  %267 = vrot.lane.b32.xlu0 %v203_v35, %s650_s27 }
  0xef   : > { %405 = vrot.lane.b32.xlu1 %v339_v49, %s650_s27  ;;  %269 = vrot.lane.b32.xlu0 %v204_v39, %s650_s27 }
  0xf3   : > { %218 = vrot.lane.b32.xlu1 %v204_v39, %s646_s15  ;;  %271 = vrot.lane.b32.xlu0 %v205_v50, %s650_s27 }
  0xf7   : > { %407 = vrot.lane.b32.xlu1 %v340_v54, %s650_s27  ;;  %273 = vrot.lane.b32.xlu0 %v206_v55, %s650_s27 }
  0xfb   : > { %418 = vrot.lane.b32.xlu1 %v756_v1, %s647_s9  ;;  %290 = vrot.lane.b32.xlu0 %v785_v22, %s647_s9 }
  0xff   : > { %420 = vrot.lane.b32.xlu1 %v753_v0, %s647_s9 }
 0x103   : > { %422 = vrot.lane.b32.xlu1 %v759_v2, %s647_s9 }
 0x107   : > { %424 = vrot.lane.b32.xlu1 %v791_v23, %s647_s9 }
 0x11d   : > { %v351_v56 = vpop.permute.xlu0 %350 }
 0x11e   : > { %363 = vst.msk [vmem:[%s810_s25 + $0x5] sm:$0x1] %vm362_vm2, %v351_v56 }
 0x125   : > { %v217_v57 = vpop.permute.xlu0 %216 }
 0x126   : > { %229 = vst.msk [vmem:[%s810_s25] sm:$0x1f] %vm228_vm3, %v217_v57 }
 0x129   : > { %v863_v58 = vpop.permute.xlu0 %284 }
 0x12d   : > { %v353_v59 = vpop.permute.xlu1 %352  ;;  %v865_v60 = vpop.permute.xlu0 %286 }
 0x12e   : > { %364 = vst.msk [vmem:[%s810_s25 + $0xd] sm:$0x1] %vm362_vm2, %v353_v59 }
 0x131   : > { %v355_v61 = vpop.permute.xlu1 %354  ;;  %v868_v62 = vpop.permute.xlu0 %288 }
 0x132   : > { %365 = vst.msk [vmem:[%s810_s25 + $0x15] sm:$0x1] %vm362_vm2, %v355_v61 }
 0x135   : > { %v357_v63 = vpop.permute.xlu1 %356  ;;  %v221_v0 = vpop.permute.xlu0 %220 }
 0x136   : > { %366 = vst.msk [vmem:[%s810_s25 + $0x1d] sm:$0x1] %vm362_vm2, %v357_v63 }
 0x137   : > { %231 = vst.msk [vmem:[%s810_s25 + $0x10] sm:$0x1f] %vm228_vm3, %v221_v0 }
 0x139   : > { %v368_v1 = vpop.permute.xlu1 %367  ;;  %v223_v2 = vpop.permute.xlu0 %222 }
 0x13a   : > { %380 = vst.msk [vmem:[%s810_s25 + $0x5] sm:$0x1] %vm379_vm4, %v368_v1 }
 0x13b   : > { %232 = vst.msk [vmem:[%s810_s25 + $0x18] sm:$0x1f] %vm228_vm3, %v223_v2 }
 0x13d   : > { %v370_v3 = vpop.permute.xlu1 %369  ;;  %v234_v4 = vpop.permute.xlu0 %233 }
 0x13e   : > { %381 = vst.msk [vmem:[%s810_s25 + $0xd] sm:$0x1] %vm379_vm4, %v370_v3 }
 0x13f   : > { %246 = vst.msk [vmem:[%s810_s25] sm:$0x1f] %vm245_vm7, %v234_v4 }
 0x141   : > { %v372_v5 = vpop.permute.xlu1 %371  ;;  %v236_v6 = vpop.permute.xlu0 %235 }
 0x142   : > { %382 = vst.msk [vmem:[%s810_s25 + $0x15] sm:$0x1] %vm379_vm4, %v372_v5 }
 0x145   : > { %v374_v7 = vpop.permute.xlu1 %373  ;;  %v238_v8 = vpop.permute.xlu0 %237 }
 0x146   : > { %383 = vst.msk [vmem:[%s810_s25 + $0x1d] sm:$0x1] %vm379_vm4, %v374_v7 }
 0x147   : > { %248 = vst.msk [vmem:[%s810_s25 + $0x10] sm:$0x1f] %vm245_vm7, %v238_v8 }
 0x149   : > { %v385_v9 = vpop.permute.xlu1 %384  ;;  %v240_v10 = vpop.permute.xlu0 %239 }
 0x14a   : > { %397 = vst.msk [vmem:[%s810_s25 + $0x5] sm:$0x1] %vm396_vm5, %v385_v9 }
 0x14b   : > { %249 = vst.msk [vmem:[%s810_s25 + $0x18] sm:$0x1f] %vm245_vm7, %v240_v10 }
 0x14d   : > { %v387_v11 = vpop.permute.xlu1 %386  ;;  %v251_v12 = vpop.permute.xlu0 %250 }
 0x14e   : > { %398 = vst.msk [vmem:[%s810_s25 + $0xd] sm:$0x1] %vm396_vm5, %v387_v11 }
 0x14f   : > { %263 = vst.msk [vmem:[%s810_s25] sm:$0x1f] %vm262_vm8, %v251_v12 }
 0x151   : > { %v389_v13 = vpop.permute.xlu1 %388  ;;  %v253_v14 = vpop.permute.xlu0 %252 }
 0x152   : > { %399 = vst.msk [vmem:[%s810_s25 + $0x15] sm:$0x1] %vm396_vm5, %v389_v13 }
 0x155   : > { %v391_v15 = vpop.permute.xlu1 %390  ;;  %v255_v16 = vpop.permute.xlu0 %254 }
 0x156   : > { %400 = vst.msk [vmem:[%s810_s25 + $0x1d] sm:$0x1] %vm396_vm5, %v391_v15 }
 0x157   : > { %265 = vst.msk [vmem:[%s810_s25 + $0x10] sm:$0x1f] %vm262_vm8, %v255_v16 }
 0x159   : > { %v402_v17 = vpop.permute.xlu1 %401  ;;  %v257_v18 = vpop.permute.xlu0 %256 }
 0x15a   : > { %414 = vst.msk [vmem:[%s810_s25 + $0x5] sm:$0x1] %vm413_vm6, %v402_v17 }
 0x15b   : > { %266 = vst.msk [vmem:[%s810_s25 + $0x18] sm:$0x1f] %vm262_vm8, %v257_v18 }
 0x15d   : > { %v404_v19 = vpop.permute.xlu1 %403  ;;  %v268_v20 = vpop.permute.xlu0 %267 }
 0x15e   : > { %415 = vst.msk [vmem:[%s810_s25 + $0xd] sm:$0x1] %vm413_vm6, %v404_v19 }
 0x15f   : > { %280 = vst.msk [vmem:[%s810_s25] sm:$0x1f] %vm279_vm10, %v268_v20 }
 0x160   : > { %297 = vst.msk [vmem:[%s810_s25] sm:$0x1f] %vm296_vm11, %v863_v58 }
 0x161   : > { %v406_v21 = vpop.permute.xlu1 %405  ;;  %v270_v22 = vpop.permute.xlu0 %269 }
 0x162   : > { %416 = vst.msk [vmem:[%s810_s25 + $0x15] sm:$0x1] %vm413_vm6, %v406_v21 }
 0x165   : > { %v219_v23 = vpop.permute.xlu1 %218  ;;  %v272_v25 = vpop.permute.xlu0 %271 }
 0x166   : > { %230 = vst.msk [vmem:[%s810_s25 + $0x8] sm:$0x1f] %vm228_vm3, %v219_v23 }
 0x167   : > { %247 = vst.msk [vmem:[%s810_s25 + $0x8] sm:$0x1f] %vm245_vm7, %v236_v6 }
 0x168   : > { %264 = vst.msk [vmem:[%s810_s25 + $0x8] sm:$0x1f] %vm262_vm8, %v253_v14 }
 0x169   : > { %v408_v24 = vpop.permute.xlu1 %407  ;;  %v274_v27 = vpop.permute.xlu0 %273  ;;  %281 = vst.msk [vmem:[%s810_s25 + $0x8] sm:$0x1f] %vm279_vm10, %v270_v22  ;;  %282 = vst.msk [vmem:[%s810_s25 + $0x10] sm:$0x1f] %vm279_vm10, %v272_v25 }
 0x16a   : > { %417 = vst.msk [vmem:[%s810_s25 + $0x1d] sm:$0x1] %vm413_vm6, %v408_v24 }
 0x16b   : > { %283 = vst.msk [vmem:[%s810_s25 + $0x18] sm:$0x1f] %vm279_vm10, %v274_v27 }
 0x16c   : > { %298 = vst.msk [vmem:[%s810_s25 + $0x8] sm:$0x1f] %vm296_vm11, %v865_v60  ;;  %299 = vst.msk [vmem:[%s810_s25 + $0x10] sm:$0x1f] %vm296_vm11, %v868_v62 }
 0x16d   : > { %v419_v26 = vpop.permute.xlu1 %418  ;;  %v291_v30 = vpop.permute.xlu0 %290 }
 0x16e   : > { %431 = vst.msk [vmem:[%s810_s25 + $0x5] sm:$0x1] %vm430_vm9, %v419_v26 }
 0x16f   : > { %300 = vst.msk [vmem:[%s810_s25 + $0x18] sm:$0x1f] %vm296_vm11, %v291_v30 }
 0x171   : > { %v421_v28 = vpop.permute.xlu1 %420 }
 0x172   : > { %432 = vst.msk [vmem:[%s810_s25 + $0xd] sm:$0x1] %vm430_vm9, %v421_v28 }
 0x175   : > { %v423_v29 = vpop.permute.xlu1 %422 }
 0x176   : > { %433 = vst.msk [vmem:[%s810_s25 + $0x15] sm:$0x1] %vm430_vm9, %v423_v29 }
 0x179   : > { %v425_v31 = vpop.permute.xlu1 %424 }
 0x17a   : > { %434 = vst.msk [vmem:[%s810_s25 + $0x1d] sm:$0x1] %vm430_vm9, %v425_v31 }
 0x17b PF: > { %p11_p8 = scmp.ge.s32.totalorder %s681_s11, 4   ;;  %s939_s6 = smov %s632_s7 }
 0x17c   : > { %s940_s7 = smov %s636_s8  ;;  %s941_s8 = smov %s691_s14 }
 0x17d   : > { %s942_s9 = smov %s681_s11  ;;  %13 = sbr.rel (!%p11_p8) target bundleno = 3 (0x3), region = 75 }
 0x184   :  { %457 = vsyncpa [#allocation3], 1 }
 0x185   :  { %459 = vsyncpa [#allocation3 + $0x1], 1 }

</bundles_post_ra>
